<compile_context>
chip_gen: v6e
topology: v6e:2x2x1
jax: 0.10.0
libtpu: 0.0.40
codegen_flags: <defaults>
</compile_context>

<pallas_src>
import functools

import jax
import jax.numpy as jnp
from jax.experimental import pallas as pl
from jax.experimental.pallas import tpu as pltpu

_LANE = 128


def _round_up(x, m):
    return ((x + m - 1) // m) * m


def hypernet_kernel(x_ref, w1_ref, b1_ref, w2_ref, b2_ref, w3_ref, b3_ref, o_ref):
    # x / W* are bf16 MXU operands; accumulation, bias add and ReLU are f32.
    x = x_ref[...]
    h1 = jnp.dot(x, w1_ref[...], preferred_element_type=jnp.float32) + b1_ref[...]
    h1 = jnp.maximum(h1, 0.0)
    h2 = jnp.dot(h1.astype(jnp.bfloat16), w2_ref[...],
                 preferred_element_type=jnp.float32) + b2_ref[...]
    h2 = jnp.maximum(h2, 0.0)
    out = jnp.dot(h2.astype(jnp.bfloat16), w3_ref[...],
                  preferred_element_type=jnp.float32) + b3_ref[...]
    o_ref[...] = out.astype(o_ref.dtype)


@functools.partial(jax.jit, static_argnames=("block_b",))
def hypernet_forward(x, w1, b1, w2, b2, w3, b3, block_b=512):
    B, input_dim = x.shape
    h1_dim = w1.shape[1]          # 128 (already lane-dense)
    h2_dim = w2.shape[1]          # 64
    num = w3.shape[1]

    # ---- lane-dense padding of the narrow dims (zero cols/rows are exact no-ops) ----
    h2_p = _round_up(h2_dim, _LANE)
    num_p = _round_up(num, _LANE)
    w2p = jnp.pad(w2, ((0, 0), (0, h2_p - h2_dim)))
    b2p = jnp.pad(b2, ((0, 0), (0, h2_p - h2_dim)))
    w3p = jnp.pad(w3, ((0, h2_p - h2_dim), (0, num_p - num)))
    b3p = jnp.pad(b3, ((0, 0), (0, num_p - num)))

    # ---- batch tiling: multiple of 8 sublanes, capped at block_b; pad B up to tile ----
    tb = min(block_b, _round_up(B, 8))
    Bp = _round_up(B, tb)
    xp = jnp.pad(x, ((0, Bp - B), (0, 0)))

    # ---- bf16 MXU operands; biases stay f32 ----
    xb = xp.astype(jnp.bfloat16)
    w1b = w1.astype(jnp.bfloat16)
    w2b = w2p.astype(jnp.bfloat16)
    w3b = w3p.astype(jnp.bfloat16)

    grid = (Bp // tb,)
    resident = lambda shape: pl.BlockSpec(shape, lambda i: (0, 0))

    flops = 2 * Bp * (input_dim * h1_dim + h1_dim * h2_p + h2_p * num_p)
    bytes_accessed = (
        xb.size * 2 + (w1b.size + w2b.size + w3b.size) * 2
        + (b1.size + b2p.size + b3p.size) * 4 + Bp * num_p * 4
    )

    out = pl.pallas_call(
        hypernet_kernel,
        out_shape=jax.ShapeDtypeStruct((Bp, num_p), jnp.float32),
        grid=grid,
        in_specs=[
            pl.BlockSpec((tb, input_dim), lambda i: (i, 0)),   # x: pipelined over batch
            resident(w1b.shape), resident(b1.shape),           # weights/biases stay resident
            resident(w2b.shape), resident(b2p.shape),
            resident(w3b.shape), resident(b3p.shape),
        ],
        out_specs=pl.BlockSpec((tb, num_p), lambda i: (i, 0)),
        compiler_params=pltpu.CompilerParams(
            dimension_semantics=("parallel",)),
        cost_estimate=pl.CostEstimate(
            flops=flops, transcendentals=0, bytes_accessed=bytes_accessed),
    )(xb, w1b, b1, w2b, b2p, w3b, b3p)

    return out[:B, :num]


def init_params(key, input_dim, num):
    # Deterministic synthetic init (PyTorch-style uniform fan-in bounds).
    def linear(key, fan_in, fan_out):
        kw, kb = jax.random.split(key)
        bound = 1.0 / jnp.sqrt(fan_in)
        w = jax.random.uniform(kw, (fan_in, fan_out), jnp.float32, -bound, bound)
        # biases kept 2-D (1, out) for clean lane-major broadcasting in-kernel
        b = jax.random.uniform(kb, (1, fan_out), jnp.float32, -bound, bound)
        return w, b

    k1, k2, k3 = jax.random.split(key, 3)
    w1, b1 = linear(k1, input_dim, 128)
    w2, b2 = linear(k2, 128, 64)
    w3, b3 = linear(k3, 64, num)
    return w1, b1, w2, b2, w3, b3


def reference_forward(x, w1, b1, w2, b2, w3, b3):
    # Pure-JAX reference mirroring the kernel's bf16 MXU operands / f32 accumulation.
    bf = jnp.bfloat16
    h1 = jnp.maximum(
        jnp.dot(x.astype(bf), w1.astype(bf), preferred_element_type=jnp.float32) + b1, 0.0)
    h2 = jnp.maximum(
        jnp.dot(h1.astype(bf), w2.astype(bf), preferred_element_type=jnp.float32) + b2, 0.0)
    return jnp.dot(h2.astype(bf), w3.astype(bf), preferred_element_type=jnp.float32) + b3


def reference_forward_f32(x, w1, b1, w2, b2, w3, b3):
    h1 = jnp.maximum(x @ w1 + b1, 0.0)
    h2 = jnp.maximum(h1 @ w2 + b2, 0.0)
    return h2 @ w3 + b3


if __name__ == "__main__":
    key = jax.random.PRNGKey(0)
    kx, kp, kx2 = jax.random.split(key, 3)

    B, input_dim, num = 8, 32, 16
    x = jax.random.normal(kx, (B, input_dim), jnp.float32)
    params = init_params(kp, input_dim, num)

    out = jax.block_until_ready(hypernet_forward(x, *params))
    assert out.shape == (B, num)
    ref = reference_forward(x, *params)
    assert jnp.allclose(out, ref, atol=1e-3, rtol=1e-3)
    ref_f32 = reference_forward_f32(x, *params)
    assert jnp.allclose(out, ref_f32, atol=5e-2, rtol=5e-2)

    # Exercise the multi-tile / padded-batch path (grid > 1, B not a multiple of the tile).
    B2 = 300
    x2 = jax.random.normal(kx2, (B2, input_dim), jnp.float32)
    out2 = jax.block_until_ready(hypernet_forward(x2, *params, block_b=128))
    assert out2.shape == (B2, num)
    ref2 = reference_forward(x2, *params)
    assert jnp.allclose(out2, ref2, atol=1e-3, rtol=1e-3)

    print("KERNEL_OK")
</pallas_src>

<mosaic_0001>
module attributes {stable_mosaic.version = 11 : i64} {
  func.func @hypernet_kernel(%arg0: i32, %arg1: memref<8x32xbf16, #tpu.memory_space<vmem>>, %arg2: memref<32x128xbf16, #tpu.memory_space<vmem>>, %arg3: memref<1x128xf32, #tpu.memory_space<vmem>>, %arg4: memref<128x128xbf16, #tpu.memory_space<vmem>>, %arg5: memref<1x128xf32, #tpu.memory_space<vmem>>, %arg6: memref<128x128xbf16, #tpu.memory_space<vmem>>, %arg7: memref<1x128xf32, #tpu.memory_space<vmem>>, %arg8: memref<8x128xf32, #tpu.memory_space<vmem>>) attributes {dimension_semantics = [#tpu.dimension_semantics<parallel>], iteration_bounds = array<i64: 1>, scalar_prefetch = 0 : i64, scratch_operands = 0 : i64, tpu.core_type = #tpu.core_type<tc>, window_params = [{transform_indices = @transform_0, window_bounds = array<i64: 8, 32>}, {pipeline_mode = #tpu.pipeline_mode<synchronous>, transform_indices = @transform_1, window_bounds = array<i64: 32, 128>}, {pipeline_mode = #tpu.pipeline_mode<synchronous>, transform_indices = @transform_2, window_bounds = array<i64: 1, 128>}, {pipeline_mode = #tpu.pipeline_mode<synchronous>, transform_indices = @transform_3, window_bounds = array<i64: 128, 128>}, {pipeline_mode = #tpu.pipeline_mode<synchronous>, transform_indices = @transform_4, window_bounds = array<i64: 1, 128>}, {pipeline_mode = #tpu.pipeline_mode<synchronous>, transform_indices = @transform_5, window_bounds = array<i64: 128, 128>}, {pipeline_mode = #tpu.pipeline_mode<synchronous>, transform_indices = @transform_6, window_bounds = array<i64: 1, 128>}, {transform_indices = @transform_7, window_bounds = array<i64: 8, 128>}]} {
    %c0 = arith.constant 0 : index
    %c0_0 = arith.constant 0 : index
    %0 = vector.load %arg1[%c0, %c0_0] : memref<8x32xbf16, #tpu.memory_space<vmem>>, vector<8x32xbf16>
    %c0_1 = arith.constant 0 : index
    %c0_2 = arith.constant 0 : index
    %1 = vector.load %arg2[%c0_1, %c0_2] : memref<32x128xbf16, #tpu.memory_space<vmem>>, vector<32x128xbf16>
    %cst = arith.constant dense<0.000000e+00> : vector<8x128xf32>
    %2 = tpu.matmul %0, %1, %cst {dimension_numbers = #tpu.dot_dimension_numbers<[1], [0], [0], [1], [0, 0, 1, 1], [], []>} : vector<8x32xbf16>, vector<32x128xbf16>, vector<8x128xf32> -> vector<8x128xf32>
    %c0_3 = arith.constant 0 : index
    %c0_4 = arith.constant 0 : index
    %3 = vector.load %arg3[%c0_3, %c0_4] : memref<1x128xf32, #tpu.memory_space<vmem>>, vector<1x128xf32>
    %4 = vector.broadcast %3 : vector<1x128xf32> to vector<8x128xf32>
    %5 = arith.addf %2, %4 : vector<8x128xf32>
    %cst_5 = arith.constant 0.000000e+00 : f32
    %6 = vector.broadcast %cst_5 : f32 to vector<8x128xf32>
    %7 = arith.maximumf %5, %6 : vector<8x128xf32>
    %8 = arith.truncf %7 : vector<8x128xf32> to vector<8x128xbf16>
    %c0_6 = arith.constant 0 : index
    %c0_7 = arith.constant 0 : index
    %9 = vector.load %arg4[%c0_6, %c0_7] : memref<128x128xbf16, #tpu.memory_space<vmem>>, vector<128x128xbf16>
    %cst_8 = arith.constant dense<0.000000e+00> : vector<8x128xf32>
    %10 = tpu.matmul %8, %9, %cst_8 {dimension_numbers = #tpu.dot_dimension_numbers<[1], [0], [0], [1], [0, 0, 1, 1], [], []>} : vector<8x128xbf16>, vector<128x128xbf16>, vector<8x128xf32> -> vector<8x128xf32>
    %c0_9 = arith.constant 0 : index
    %c0_10 = arith.constant 0 : index
    %11 = vector.load %arg5[%c0_9, %c0_10] : memref<1x128xf32, #tpu.memory_space<vmem>>, vector<1x128xf32>
    %12 = vector.broadcast %11 : vector<1x128xf32> to vector<8x128xf32>
    %13 = arith.addf %10, %12 : vector<8x128xf32>
    %cst_11 = arith.constant 0.000000e+00 : f32
    %14 = vector.broadcast %cst_11 : f32 to vector<8x128xf32>
    %15 = arith.maximumf %13, %14 : vector<8x128xf32>
    %16 = arith.truncf %15 : vector<8x128xf32> to vector<8x128xbf16>
    %c0_12 = arith.constant 0 : index
    %c0_13 = arith.constant 0 : index
    %17 = vector.load %arg6[%c0_12, %c0_13] : memref<128x128xbf16, #tpu.memory_space<vmem>>, vector<128x128xbf16>
    %cst_14 = arith.constant dense<0.000000e+00> : vector<8x128xf32>
    %18 = tpu.matmul %16, %17, %cst_14 {dimension_numbers = #tpu.dot_dimension_numbers<[1], [0], [0], [1], [0, 0, 1, 1], [], []>} : vector<8x128xbf16>, vector<128x128xbf16>, vector<8x128xf32> -> vector<8x128xf32>
    %c0_15 = arith.constant 0 : index
    %c0_16 = arith.constant 0 : index
    %19 = vector.load %arg7[%c0_15, %c0_16] : memref<1x128xf32, #tpu.memory_space<vmem>>, vector<1x128xf32>
    %20 = vector.broadcast %19 : vector<1x128xf32> to vector<8x128xf32>
    %21 = arith.addf %18, %20 : vector<8x128xf32>
    %c0_17 = arith.constant 0 : index
    %c0_18 = arith.constant 0 : index
    %22 = vector.load %arg8[%c0_17, %c0_18] : memref<8x128xf32, #tpu.memory_space<vmem>>, vector<8x128xf32>
    tpu.vector_store %arg8[%c0_17, %c0_18], %21 {strides = array<i32>} : memref<8x128xf32, #tpu.memory_space<vmem>>, vector<8x128xf32>,
    return
  }
  func.func @transform_0(%arg0: i32) -> (i32, i32) {
    %c0_i32 = arith.constant 0 : i32
    %c0_i32_0 = arith.constant 0 : i32
    return %arg0, %c0_i32 : i32, i32
  }
  func.func @transform_1(%arg0: i32) -> (i32, i32) {
    %c0_i32 = arith.constant 0 : i32
    %c0_i32_0 = arith.constant 0 : i32
    %c0_i32_1 = arith.constant 0 : i32
    return %c0_i32, %c0_i32_0 : i32, i32
  }
  func.func @transform_2(%arg0: i32) -> (i32, i32) {
    %c0_i32 = arith.constant 0 : i32
    %c0_i32_0 = arith.constant 0 : i32
    %c0_i32_1 = arith.constant 0 : i32
    return %c0_i32, %c0_i32_0 : i32, i32
  }
  func.func @transform_3(%arg0: i32) -> (i32, i32) {
    %c0_i32 = arith.constant 0 : i32
    %c0_i32_0 = arith.constant 0 : i32
    %c0_i32_1 = arith.constant 0 : i32
    return %c0_i32, %c0_i32_0 : i32, i32
  }
  func.func @transform_4(%arg0: i32) -> (i32, i32) {
    %c0_i32 = arith.constant 0 : i32
    %c0_i32_0 = arith.constant 0 : i32
    %c0_i32_1 = arith.constant 0 : i32
    return %c0_i32, %c0_i32_0 : i32, i32
  }
  func.func @transform_5(%arg0: i32) -> (i32, i32) {
    %c0_i32 = arith.constant 0 : i32
    %c0_i32_0 = arith.constant 0 : i32
    %c0_i32_1 = arith.constant 0 : i32
    return %c0_i32, %c0_i32_0 : i32, i32
  }
  func.func @transform_6(%arg0: i32) -> (i32, i32) {
    %c0_i32 = arith.constant 0 : i32
    %c0_i32_0 = arith.constant 0 : i32
    %c0_i32_1 = arith.constant 0 : i32
    return %c0_i32, %c0_i32_0 : i32, i32
  }
  func.func @transform_7(%arg0: i32) -> (i32, i32) {
    %c0_i32 = arith.constant 0 : i32
    %c0_i32_0 = arith.constant 0 : i32
    return %arg0, %c0_i32 : i32, i32
  }
}

</mosaic_0001>

<bundles_post_ra>
// kernel: hypernet_forward.1
= control target key start
LH: loop header
LB: loop body
LE: loop exit
PB: predicated region body
PF: predicated region fallthrough
CT: control target
= control target key end

     0   :  { %v471_v1 = vmov 0.0   ;;  %vm472_vm0 = vmmov 0   ;;  %vm52_vm1 = vcmask 261120   ;;  %s607_s0 = inlined_call_operand.vmem [shape: bf16[8,32], index: 0, kind: input, shape index: {}]   ;;  %s608_s1 = inlined_call_operand.vmem [shape: bf16[32,128], index: 1, kind: input, shape index: {}]   ;;  %s609_s2 = inlined_call_operand.vmem [shape: f32[1,128], index: 2, kind: input, shape index: {}]   ;;  %s610_s3 = inlined_call_operand.vmem [shape: bf16[128,128], index: 3, kind: input, shape index: {}]   ;;  %s611_s4 = inlined_call_operand.vmem [shape: f32[1,128], index: 4, kind: input, shape index: {}]   ;;  %s612_s5 = inlined_call_operand.vmem [shape: bf16[128,128], index: 5, kind: input, shape index: {}]   ;;  %s613_s6 = inlined_call_operand.vmem [shape: f32[1,128], index: 6, kind: input, shape index: {}]   ;;  %s614_s7 = inlined_call_operand.hbm [shape: f32[8,128], index: 7, kind: output, shape index: {}]  }
   0x1   :  { %v431_v0 = vld [vmem:[%s608_s1 + $0x8] sm:$0xff]   ;;  %380 = vmatprep.subr.bf16.mxu0 %v471_v1  ;;  %388 = vmatprep.subr.bf16.mxu1 %v471_v1  ;;  %v432_v2 = vld [vmem:[%s608_s1] sm:$0xff]   ;;  %v433_v3 = vld [vmem:[%s610_s3 + $0x38] sm:$0xff]  }
   0x2   :  { %381 = vmatpush3.bf16.msra.mxu0 %v431_v0  ;;  %384 = vmatprep.mubr.msk.bf16.mxu0 %vm472_vm0, %v471_v1  ;;  %v434_v4 = vld [vmem:[%s610_s3 + $0x30] sm:$0xff]   ;;  %v28_v5 = vld [vmem:[%s607_s0] sm:$0xf]  ;;  %v435_v6 = vld [vmem:[%s610_s3 + $0x28] sm:$0xff]  }
   0x3   :  { %382 = vmatprep.subr.bf16.mxu0 %v471_v1  ;;  %404 = vmatprep.mubr.msk.bf16.mxu1 %vm472_vm0, %v471_v1  ;;  %v436_v7 = vld [vmem:[%s610_s3 + $0x20] sm:$0xff]  }
   0x4   :  { %389 = vmatpush3.bf16.msra.mxu1 %v433_v3 }
   0x5   :  { %390 = vmatprep.subr.bf16.mxu1 %v471_v1 }
   0x6   :  { %383 = vmatpush3.bf16.msra.mxu0 %v432_v2 }
   0x7   :  { %408 = vmatprep.subr.bf16.mxu0 %v471_v1 }
   0x8   :  { %391 = vmatpush3.bf16.msra.mxu1 %v434_v4 }
   0x9   :  { %385 = vmatmul.mubr.msk.bf16.vlgmr.msra.gmra.mxu0 %vm52_vm1, %v28_v5  ;;  %392 = vmatprep.subr.bf16.mxu1 %v471_v1 }
   0xa   :  { %424 = vmatprep.mubr.msk.bf16.mxu0 %vm472_vm0, %v471_v1 }
   0xc   :  { %393 = vmatpush3.bf16.msra.mxu1 %v435_v6 }
   0xd   :  { %394 = vmatprep.subr.bf16.mxu1 %v471_v1 }
   0xe   :  { %12 = vsyncpa [#allocation3], 0  ;;  %v437_v8 = vld [vmem:[%s610_s3 + $0x18] sm:$0xff]   ;;  %v438_v9 = vld [vmem:[%s610_s3 + $0x10] sm:$0xff]   ;;  %s473_s16 = smov [#allocation2]  }
   0xf   :  { %v439_v10 = vld [vmem:[%s610_s3 + $0x8] sm:$0xff]   ;;  %v440_v11 = vld [vmem:[%s610_s3] sm:$0xff]   ;;  %v441_v12 = vld [vmem:[%s612_s5 + $0x38] sm:$0xff]   ;;  %s329_s17 = sshll.u32 %s473_s16, 4  ;;  %s330_s17 = int_to_ptr.vmem [resolvable:$true] %s329_s17 }
  0x10   :  { %395 = vmatpush3.bf16.msra.mxu1 %v436_v7  ;;  %409 = vmatpush3.bf16.msra.mxu0 %v441_v12  ;;  %v442_v13 = vld [vmem:[%s612_s5 + $0x30] sm:$0xff]   ;;  %v443_v14 = vld [vmem:[%s612_s5 + $0x28] sm:$0xff]   ;;  %v444_v15 = vld [vmem:[%s612_s5 + $0x20] sm:$0xff]   ;;  %p454_p1 = scmp.lt.s32.totalorder %s330_s17, %s330_s17 }
  0x11   :  { %396 = vmatprep.subr.bf16.mxu1 %v471_v1  ;;  %410 = vmatprep.subr.bf16.mxu0 %v471_v1  ;;  %v445_v16 = vld [vmem:[%s612_s5 + $0x18] sm:$0xff]   ;;  %v446_v17 = vld [vmem:[%s612_s5 + $0x10] sm:$0xff]   ;;  %v337_v18 = vld [vmem:[%s609_s2] ss:$0 sm:$0xff] }
  0x12   :  { %v447_v26 = vld [vmem:[%s612_s5 + $0x8] sm:$0xff]   ;;  %v448_v27 = vld [vmem:[%s612_s5] sm:$0xff]  }
  0x13   :  { %v341_v28 = vld [vmem:[%s611_s4] ss:$0 sm:$0xff]  ;;  %s449_s4 = scalar_lea.vmem %s330_s17, 128 }
  0x14   :  { %397 = vmatpush3.bf16.msra.mxu1 %v437_v8  ;;  %411 = vmatpush3.bf16.msra.mxu0 %v442_v13  ;;  %v350_v36 = vld [vmem:[%s613_s6] ss:$0 sm:$0xff]  ;;  %p450_p0 = scmp.ne.s32.totalorder %s330_s17, %s449_s4  ;;  %p455_p2 = scmp.lt.s32.totalorder %s449_s4, %s449_s4 }
  0x15   :  { %398 = vmatprep.subr.bf16.mxu1 %v471_v1  ;;  %412 = vmatprep.subr.bf16.mxu0 %v471_v1 }
  0x16   :  { %p456_p3 = por %p455_p2, %p454_p1 }
  0x18   :  { %399 = vmatpush3.bf16.msra.mxu1 %v438_v9  ;;  %413 = vmatpush3.bf16.msra.mxu0 %v443_v14  ;;  %p457_p4 = pnand %p456_p3, %p450_p0 }
  0x19   :  { %400 = vmatprep.subr.bf16.mxu1 %v471_v1  ;;  %414 = vmatprep.subr.bf16.mxu0 %v471_v1 }
  0x1c   :  { %401 = vmatpush3.bf16.msra.mxu1 %v439_v10  ;;  %415 = vmatpush3.bf16.msra.mxu0 %v444_v15 }
  0x1d   :  { %402 = vmatprep.subr.bf16.mxu1 %v471_v1  ;;  %416 = vmatprep.subr.bf16.mxu0 %v471_v1 }
  0x20   :  { %403 = vmatpush3.bf16.msra.mxu1 %v440_v11  ;;  %417 = vmatpush3.bf16.msra.mxu0 %v445_v16 }
  0x21   :  { %418 = vmatprep.subr.bf16.mxu0 %v471_v1 }
  0x24   :  { %419 = vmatpush3.bf16.msra.mxu0 %v446_v17 }
  0x25   :  { %420 = vmatprep.subr.bf16.mxu0 %v471_v1 }
  0x28   :  { %421 = vmatpush3.bf16.msra.mxu0 %v447_v26 }
  0x29   :  { %422 = vmatprep.subr.bf16.mxu0 %v471_v1 }
  0x2c   :  { %423 = vmatpush3.bf16.msra.mxu0 %v448_v27 }
  0xc9   :  { %v90_v19 = vpop.f32.mrf.mxu0 }
  0xca   :  { %v91_v20 = vadd.f32 %v337_v18, %v90_v19 }
  0xcb   :  { %v386_v21 = vpop.f32.mrf.mxu0 }
  0xcc   :  { %v96_v22 = vmax.f32 %v91_v20, 0.0 }
  0xcd   :  { %v93_v23 = vpop.f32.mrf.mxu0 }
  0xce   :  { %v97_v24 = vpack.c.bf16 %v96_v22, %v96_v22 }
  0xcf   :  { %v387_v25 = vpop.f32.mrf.mxu0 }
  0xd0   :  { %405 = vmatmul.mubr.bf16.vlgmr.msra.gmra.mxu1 %v97_v24 }
 0x190   :  { %v203_v29 = vpop.f32.mrf.mxu1 }
 0x191   :  { %v204_v30 = vadd.f32 %v341_v28, %v203_v29 }
 0x192   :  { %v406_v31 = vpop.f32.mrf.mxu1 }
 0x193   :  { %v209_v32 = vmax.f32 %v204_v30, 0.0 }
 0x194   :  { %v206_v33 = vpop.f32.mrf.mxu1 }
 0x195   :  { %v210_v34 = vpack.c.bf16 %v209_v32, %v209_v32 }
 0x196   :  { %v407_v35 = vpop.f32.mrf.mxu1 }
 0x197   :  { %425 = vmatmul.mubr.bf16.vlgmr.msra.gmra.mxu0 %v210_v34 }
 0x257   :  { %v316_v37 = vpop.f32.mrf.mxu0 }
 0x258   :  { %v317_v38 = vadd.f32 %v350_v36, %v316_v37 }
 0x259   :  { %v426_v39 = vpop.f32.mrf.mxu0 }
 0x25a   :  { %322 = vst [vmem:[#allocation2] sm:$0xff] %v317_v38 }
 0x25b   :  { %v319_v40 = vpop.f32.mrf.mxu0 }
 0x25c   :  { %460 = shalt.err (!%p457_p4)
}
 0x25d   :  { %332 = dma.vmem_to_hbm [thread:$0]  %s330_s17, 128, %s614_s7, [#allocation3]   ;;  %v427_v41 = vpop.f32.mrf.mxu0 }
 0x25e   :  { %469 = dma.done.wait [#allocation3], 128  }
 0x25f   :  { %470 = vsyncadd [#allocation3], 4294967168 }
 0x260   :  { %336 = vsyncpa [#allocation3], 1 }

</bundles_post_ra>
